<compile_context>
chip_gen: v5e
topology: v5e:2x2
jax: 0.10.0
libtpu: 0.0.40
codegen_flags: <defaults>
</compile_context>

<pallas_src>
import functools

import jax
import jax.numpy as jnp
from jax.experimental import pallas as pl
from jax.experimental.pallas import tpu as pltpu

_LANE = 128        # vreg lane width
_SUBLANE = 8       # vreg sublane width
_NEG_BIG = -1e30   # bias sentinel for padded output columns: exp() underflows to exactly 0


def _round_up(x, m):
    return pl.cdiv(x, m) * m


# ---------------------------------------------------------------------------
# Kernels
# ---------------------------------------------------------------------------
def _softmax_store(logits, o_ref):
    # Numerically stable row softmax in f32. Padded output columns carry a -1e30 bias,
    # so they never win the max and exp() of them is exactly 0 -> denominator is exact.
    m = jnp.max(logits, axis=-1, keepdims=True)
    e = jnp.exp(logits - m)
    denom = jnp.sum(e, axis=-1, keepdims=True)
    # Exact divide (NOT pl.reciprocal(approx=True)): rows must sum to 1 to f32 precision.
    o_ref[...] = (e / denom).astype(o_ref.dtype)


def _clf_kernel_resident(x_ref, w_ref, b_ref, o_ref):
    """Whole contraction dim resident: one MXU dot + row softmax per batch tile."""
    # bf16 x bf16 -> f32 accumulation on the MXU (astype is a no-op if dtypes already match).
    logits = jnp.dot(x_ref[...].astype(w_ref.dtype), w_ref[...],
                     preferred_element_type=jnp.float32) + b_ref[...]
    _softmax_store(logits, o_ref)


def _clf_kernel_ktiled(x_ref, w_ref, b_ref, o_ref, acc_ref):
    """Contraction (D) tiled: accumulate logits in f32 VMEM scratch, softmax on last k step."""
    k = pl.program_id(1)

    @pl.when(k == 0)
    def _():
        acc_ref[...] = jnp.zeros_like(acc_ref)

    acc_ref[...] += jnp.dot(x_ref[...].astype(w_ref.dtype), w_ref[...],
                            preferred_element_type=jnp.float32)

    @pl.when(k == pl.num_programs(1) - 1)
    def _():
        _softmax_store(acc_ref[...] + b_ref[...], o_ref)


# ---------------------------------------------------------------------------
# One-time parameter prep + forward wrapper
# ---------------------------------------------------------------------------
def prepare_clf_params(weight, bias, *, weight_dtype=jnp.bfloat16, lane_multiple=_LANE,
                       block_k=512, max_resident_weight_bytes=8 << 20):
    """One-time parameter prep (NOT per forward call).

    weight: torch-style (output_dim, input_dim); bias: (output_dim,).
    Returns (w_p (D_pad, O_pad) weight_dtype, b_p (1, O_pad) f32, output_dim, k_block).
    Use lane_multiple=256 to better fill the 256x256 MXU on v6e/v7x.
    """
    out_dim, in_dim = weight.shape
    o_pad = _round_up(out_dim, lane_multiple)           # lane-dense (unmasked vst) output
    itemsize = jnp.dtype(weight_dtype).itemsize
    if in_dim * o_pad * itemsize <= max_resident_weight_bytes:
        k_block = in_dim                                # whole weight stays VMEM-resident
        d_pad = in_dim
    else:
        assert block_k % _LANE == 0
        k_block = block_k                               # stream (k_block, O_pad) weight slabs
        d_pad = _round_up(in_dim, k_block)

    w_t = jnp.asarray(weight, weight_dtype).T                          # (D, O)
    w_p = jnp.pad(w_t, ((0, d_pad - in_dim), (0, o_pad - out_dim)))    # zero pad rows/cols
    b_p = jnp.pad(jnp.asarray(bias, jnp.float32), (0, o_pad - out_dim),
                  constant_values=_NEG_BIG).reshape(1, o_pad)          # -1e30 on padded cols
    return w_p, b_p, out_dim, k_block


@functools.partial(jax.jit, static_argnames=("out_dim", "k_block", "block_b", "out_dtype"))
def clf_forward(x, w_p, b_p, *, out_dim, k_block, block_b=256, out_dtype=jnp.float32):
    """x: (B, D); w_p: (D_pad, O_pad); b_p: (1, O_pad). Returns (B, out_dim) softmax probs."""
    B, D = x.shape
    d_pad, o_pad = w_p.shape
    assert b_p.shape == (1, o_pad) and d_pad >= D and d_pad % k_block == 0
    nk = d_pad // k_block

    # Balanced batch tiling: padding waste < one tile, and >=2 grid steps whenever B >= 16
    # so the "parallel" axis can shard across v7x's two TensorCores.
    nb = pl.cdiv(B, block_b)
    if nb == 1 and B >= 2 * _SUBLANE:
        nb = 2
    tb = _round_up(pl.cdiv(B, nb), _SUBLANE)
    nb = pl.cdiv(B, tb)
    b_padded = nb * tb

    x_p = x
    if b_padded != B or d_pad != D:
        x_p = jnp.pad(x, ((0, b_padded - B), (0, d_pad - D)))

    # VMEM budget: weight buffers + double-buffered x/out tiles + f32 accumulator + bias.
    w_bufs = 1 if nk == 1 else 2
    x_isz = jnp.dtype(x.dtype).itemsize
    o_isz = jnp.dtype(out_dtype).itemsize
    w_isz = jnp.dtype(w_p.dtype).itemsize
    vmem_bytes = (w_bufs * k_block * o_pad * w_isz
                  + 2 * tb * k_block * x_isz
                  + 2 * tb * o_pad * o_isz
                  + tb * o_pad * 4
                  + 2 * o_pad * 4)
    # TODO(synk): for very large output_dim, tile O_pad with a two-pass/online softmax;
    # currently one (k_block, O_pad) weight slab + (tb, O_pad) tiles must fit in VMEM.
    assert vmem_bytes < (48 << 20), (
        f"Clf tile footprint {vmem_bytes / 2**20:.1f} MiB exceeds VMEM budget; "
        "lower block_k / block_b or add output-dim tiling.")
    vmem_limit = int(min(max(vmem_bytes + (8 << 20), 32 << 20), 100 << 20))

    if nk == 1:
        grid = (nb,)
        kernel = _clf_kernel_resident
        in_specs = [
            pl.BlockSpec((tb, d_pad), lambda i: (i, 0)),                  # streamed batch tiles
            pl.BlockSpec((d_pad, o_pad), lambda i: (0, 0),
                         pipeline_mode=pl.Buffered(1)),                   # resident weight, 1 buffer
            pl.BlockSpec((1, o_pad), lambda i: (0, 0),
                         pipeline_mode=pl.Buffered(1)),                   # resident bias, 1 buffer
        ]
        out_specs = pl.BlockSpec((tb, o_pad), lambda i: (i, 0))
        scratch_shapes = []
        dims = ("parallel",)
    else:
        grid = (nb, nk)
        kernel = _clf_kernel_ktiled
        in_specs = [
            pl.BlockSpec((tb, k_block), lambda i, k: (i, k)),             # streamed x slabs
            pl.BlockSpec((k_block, o_pad), lambda i, k: (k, 0)),          # streamed weight slabs
            pl.BlockSpec((1, o_pad), lambda i, k: (0, 0),
                         pipeline_mode=pl.Buffered(1)),                   # resident bias
        ]
        out_specs = pl.BlockSpec((tb, o_pad), lambda i, k: (i, 0))        # acc-resident output
        scratch_shapes = [pltpu.VMEM((tb, o_pad), jnp.float32)]
        dims = ("parallel", "arbitrary")

    out = pl.pallas_call(
        kernel,
        out_shape=jax.ShapeDtypeStruct((b_padded, o_pad), out_dtype),
        grid_spec=pltpu.PrefetchScalarGridSpec(
            num_scalar_prefetch=0,
            grid=grid,
            in_specs=in_specs,
            out_specs=out_specs,
            scratch_shapes=scratch_shapes,
        ),
        compiler_params=pltpu.CompilerParams(
            dimension_semantics=dims,
            vmem_limit_bytes=vmem_limit,
        ),
    )(x_p, w_p, b_p)

    if b_padded == B and o_pad == out_dim:
        return out                      # no padding introduced -> skip the slice copy
    return out[:B, :out_dim]


def reference_forward(x, weight, bias):
    return jax.nn.softmax(x @ weight.T + bias, axis=-1)


def _run_case(key, batch, input_dim, output_dim, **prep_kwargs):
    k_x, k_w, k_b = jax.random.split(key, 3)
    # torch.nn.Linear default init: U(-1/sqrt(in), 1/sqrt(in)).
    bound = 1.0 / jnp.sqrt(jnp.float32(input_dim))
    weight = jax.random.uniform(k_w, (output_dim, input_dim),
                                minval=-bound, maxval=bound, dtype=jnp.float32)
    bias = jax.random.uniform(k_b, (output_dim,),
                              minval=-bound, maxval=bound, dtype=jnp.float32)
    x = jax.random.normal(k_x, (batch, input_dim), dtype=jnp.float32)

    w_p, b_p, o_dim, k_block = prepare_clf_params(weight, bias, **prep_kwargs)
    out = clf_forward(x, w_p, b_p, out_dim=o_dim, k_block=k_block)
    out = jax.block_until_ready(out)

    ref = reference_forward(x, weight, bias)
    assert out.shape == (batch, output_dim)
    # bf16 matmul operands -> slightly looser elementwise tolerance vs the f32 reference.
    assert jnp.allclose(out, ref, atol=2e-2, rtol=2e-2), "mismatch vs reference"
    # Exact divide -> rows sum to 1 to (near) f32 precision.
    assert jnp.allclose(jnp.sum(out, axis=-1), 1.0, atol=1e-4, rtol=0.0)


if __name__ == "__main__":
    key = jax.random.PRNGKey(0)
    k1, k2 = jax.random.split(key)

    # Case 1: small head -> resident-weight path (single dot + softmax per batch tile).
    _run_case(k1, batch=10, input_dim=32, output_dim=16)

    # Case 2: force the contraction-tiled fallback (streamed weight slabs, f32 accumulator)
    # and a 2-step batch grid, exercising padding on every dim.
    _run_case(k2, batch=20, input_dim=256, output_dim=8,
              max_resident_weight_bytes=0, block_k=128)

    print("KERNEL_OK")
</pallas_src>

<mosaic_0001>
module attributes {stable_mosaic.version = 11 : i64} {
  func.func @_clf_kernel_resident(%arg0: i32, %arg1: memref<16x32xf32, #tpu.memory_space<vmem>>, %arg2: memref<32x128xbf16, #tpu.memory_space<vmem>>, %arg3: memref<1x128xf32, #tpu.memory_space<vmem>>, %arg4: memref<16x128xf32, #tpu.memory_space<vmem>>) attributes {dimension_semantics = [#tpu.dimension_semantics<parallel>], iteration_bounds = array<i64: 1>, scalar_prefetch = 0 : i64, scratch_operands = 0 : i64, tpu.core_type = #tpu.core_type<tc>, window_params = [{transform_indices = @transform_0, window_bounds = array<i64: 16, 32>}, {pipeline_mode = #tpu.pipeline_mode<synchronous>, transform_indices = @transform_1, window_bounds = array<i64: 32, 128>}, {pipeline_mode = #tpu.pipeline_mode<synchronous>, transform_indices = @transform_2, window_bounds = array<i64: 1, 128>}, {transform_indices = @transform_3, window_bounds = array<i64: 16, 128>}]} {
    %c0 = arith.constant 0 : index
    %c0_0 = arith.constant 0 : index
    %0 = vector.load %arg1[%c0, %c0_0] : memref<16x32xf32, #tpu.memory_space<vmem>>, vector<16x32xf32>
    %1 = arith.truncf %0 : vector<16x32xf32> to vector<16x32xbf16>
    %c0_1 = arith.constant 0 : index
    %c0_2 = arith.constant 0 : index
    %2 = vector.load %arg2[%c0_1, %c0_2] : memref<32x128xbf16, #tpu.memory_space<vmem>>, vector<32x128xbf16>
    %cst = arith.constant dense<0.000000e+00> : vector<16x128xf32>
    %3 = tpu.matmul %1, %2, %cst {dimension_numbers = #tpu.dot_dimension_numbers<[1], [0], [0], [1], [0, 0, 1, 1], [], []>} : vector<16x32xbf16>, vector<32x128xbf16>, vector<16x128xf32> -> vector<16x128xf32>
    %c0_3 = arith.constant 0 : index
    %c0_4 = arith.constant 0 : index
    %4 = vector.load %arg3[%c0_3, %c0_4] : memref<1x128xf32, #tpu.memory_space<vmem>>, vector<1x128xf32>
    %5 = vector.broadcast %4 : vector<1x128xf32> to vector<16x128xf32>
    %6 = arith.addf %3, %5 : vector<16x128xf32>
    %cst_5 = arith.constant dense<0xFF800000> : vector<16xf32>
    %7 = vector.multi_reduction <maximumf>, %6, %cst_5 [1] : vector<16x128xf32> to vector<16xf32>
    %8 = vector.shape_cast %7 : vector<16xf32> to vector<16x1xf32>
    %9 = vector.broadcast %8 : vector<16x1xf32> to vector<16x128xf32>
    %10 = arith.subf %6, %9 : vector<16x128xf32>
    %11 = math.exp %10 : vector<16x128xf32>
    %cst_6 = arith.constant dense<0.000000e+00> : vector<16xf32>
    %12 = vector.multi_reduction <add>, %11, %cst_6 [1] : vector<16x128xf32> to vector<16xf32>
    %13 = vector.shape_cast %12 : vector<16xf32> to vector<16x1xf32>
    %14 = vector.broadcast %13 : vector<16x1xf32> to vector<16x128xf32>
    %15 = arith.divf %11, %14 : vector<16x128xf32>
    %c0_7 = arith.constant 0 : index
    %c0_8 = arith.constant 0 : index
    %16 = vector.load %arg4[%c0_7, %c0_8] : memref<16x128xf32, #tpu.memory_space<vmem>>, vector<16x128xf32>
    tpu.vector_store %arg4[%c0_7, %c0_8], %15 {strides = array<i32>} : memref<16x128xf32, #tpu.memory_space<vmem>>, vector<16x128xf32>,
    return
  }
  func.func @transform_0(%arg0: i32) -> (i32, i32) {
    %c0_i32 = arith.constant 0 : i32
    %c0_i32_0 = arith.constant 0 : i32
    return %arg0, %c0_i32 : i32, i32
  }
  func.func @transform_1(%arg0: i32) -> (i32, i32) {
    %c0_i32 = arith.constant 0 : i32
    %c0_i32_0 = arith.constant 0 : i32
    %c0_i32_1 = arith.constant 0 : i32
    return %c0_i32, %c0_i32_0 : i32, i32
  }
  func.func @transform_2(%arg0: i32) -> (i32, i32) {
    %c0_i32 = arith.constant 0 : i32
    %c0_i32_0 = arith.constant 0 : i32
    %c0_i32_1 = arith.constant 0 : i32
    return %c0_i32, %c0_i32_0 : i32, i32
  }
  func.func @transform_3(%arg0: i32) -> (i32, i32) {
    %c0_i32 = arith.constant 0 : i32
    %c0_i32_0 = arith.constant 0 : i32
    return %arg0, %c0_i32 : i32, i32
  }
}

</mosaic_0001>

<bundles_post_ra>
// kernel: clf_forward.1
= control target key start
LH: loop header
LB: loop body
LE: loop exit
PB: predicated region body
PF: predicated region fallthrough
CT: control target
= control target key end

     0   :  { %s211_s0 = inlined_call_operand.vmem [shape: f32[16,32], index: 0, kind: input, shape index: {}]   ;;  %s212_s1 = inlined_call_operand.vmem [shape: bf16[32,128], index: 1, kind: input, shape index: {}]   ;;  %s213_s2 = inlined_call_operand.vmem [shape: f32[1,128], index: 2, kind: input, shape index: {}]   ;;  %s214_s3 = inlined_call_operand.hbm [shape: f32[16,128], index: 3, kind: output, shape index: {}]  }
   0x1   :  { %v131_v0 = vld [vmem:[%s212_s1 + $0x8] sm:$0xff]  ;;  %v130_v1 = vld [vmem:[%s212_s1] sm:$0xff] }
   0x2   :  { %49 = vmatpush.bf16.msra.mxu0 %v131_v0  ;;  %v16_v2 = vld [vmem:[%s211_s0] sm:$0xff]  ;;  %v17_v3 = vld [vmem:[%s211_s0 + $0x8] sm:$0xff] }
   0x3   :  { %8 = vsyncpa [#allocation3], 0  ;;  %v18_v4 = vpack.c.bf16 %v17_v3, %v16_v2  ;;  %vm39_vm0 = vcmask 261120   ;;  %v135_v5 = vld [vmem:[%s213_s2] ss:$0 sm:$0xff]  ;;  %s170_s0 = smov [#allocation2]  }
   0x4   :  { %s107_s1 = sshll.u32 %s170_s0, 4  ;;  %s109_s23 = sshll.u32 %s214_s3, 4  ;;  %s108_s1 = int_to_ptr.vmem [resolvable:$true] %s107_s1  ;;  %s110_s23 = int_to_ptr.hbm [resolvable:$true] %s109_s23 }
   0x5   :  { %s171_s24 = smov 128   ;;  %s172_s25 = smov 8  }
   0x6   :  { %50 = vmatpush.bf16.msra.mxu0 %v130_v1 }
   0x9   :  { %129 = vmatmul.msk.bf16.vlgmr.msra.gmra.mxu0 %vm39_vm0, %v18_v4 }
  0x86   :  { %v52_v6 = vpop.f32.mrf.mxu0 }
  0x87   :  { %v53_v7 = vadd.f32 %v135_v5, %v52_v6 }
  0x89   :  { %57 = vmax.xlane.f32.xlu0 %v53_v7 }
  0x8e   :  { %v54_v8 = vpop.f32.mrf.mxu0 }
  0x8f   :  { %v55_v9 = vadd.f32 %v135_v5, %v54_v8 }
  0x91   :  { %59 = vmax.xlane.f32.xlu0 %v55_v9 }
  0xfc   :  { %v58_v10 = vpop.xlane.xlu0 %57 }
  0xfd   :  { %v61_v11 = vsub.f32 %v53_v7, %v58_v10 }
  0xff   :  { %v63_v12 = vmul.f32 1.442695, %v61_v11 }
 0x101   :  { %136 = vpow2.f32 %v63_v12 }
 0x104   :  { %v60_v13 = vpop.xlane.xlu0 %59 }
 0x105   :  { %v62_v14 = vsub.f32 %v55_v9, %v60_v13 }
 0x107   :  { %v137_v15 = vpop.eup %136  ;;  %v65_v16 = vmul.f32 1.442695, %v62_v14 }
 0x108   :  { %67 = vadd.xlane.f32.xlu1 %v137_v15 }
 0x109   :  { %138 = vpow2.f32 %v65_v16 }
 0x10f   :  { %v139_v17 = vpop.eup %138 }
 0x110   :  { %69 = vadd.xlane.f32.xlu1 %v139_v17 }
 0x17b   :  { %v68_v18 = vpop.xlane.xlu1 %67 }
 0x17c   :  { %140 = vrcp.f32 %v68_v18  ;;  %v82_v23 = vand.u32 2147483648, %v68_v18  ;;  %v80_v25 = vand.u32 2147483647, %v68_v18  ;;  %vm76_vm2 = vweird.f32 %v68_v18 }
 0x17e   :  { %v83_v28 = vor.u32 1.1754944e-38, %v82_v23  ;;  %vm81_vm4 = vcmp.eq.f32.partialorder %v80_v25, 8.507059e+37 }
 0x182   :  { %v141_v19 = vpop.eup %140 }
 0x183   :  { %v72_v20 = vmul.f32 %v141_v19, %v68_v18  ;;  %v70_v21 = vpop.xlane.xlu1 %69  ;;  %vm77_vm1 = vweird.f32 %v141_v19 }
 0x184   :  { %142 = vrcp.f32 %v70_v21  ;;  %vm78_vm3 = vmor %vm76_vm2, %vm77_vm1  ;;  %v97_v34 = vand.u32 2147483648, %v70_v21  ;;  %v95_v36 = vand.u32 2147483647, %v70_v21  ;;  %vm91_vm6 = vweird.f32 %v70_v21 }
 0x185   :  { %v73_v22 = vsub.f32 1.0, %v72_v20 }
 0x186   :  { %v98_v38 = vor.u32 1.1754944e-38, %v97_v34  ;;  %vm96_vm8 = vcmp.eq.f32.partialorder %v95_v36, 8.507059e+37 }
 0x187   :  { %v74_v24 = vmul.f32 %v141_v19, %v73_v22 }
 0x189   :  { %v75_v26 = vadd.f32 %v141_v19, %v74_v24 }
 0x18a   :  { %v143_v27 = vpop.eup %142 }
 0x18b   :  { %v79_v29 = vsel %vm78_vm3, %v141_v19, %v75_v26  ;;  %v87_v30 = vmul.f32 %v143_v27, %v70_v21  ;;  %vm92_vm5 = vweird.f32 %v143_v27 }
 0x18c   :  { %v84_v31 = vsel %vm81_vm4, %v83_v28, %v79_v29  ;;  %vm93_vm7 = vmor %vm91_vm6, %vm92_vm5 }
 0x18d   :  { %v88_v32 = vsub.f32 1.0, %v87_v30  ;;  %v85_v33 = vmul.f32 %v137_v15, %v84_v31 }
 0x18f   :  { %v89_v35 = vmul.f32 %v143_v27, %v88_v32  ;;  %101 = vst [vmem:[#allocation2] sm:$0xff] %v85_v33 }
 0x191   :  { %v90_v37 = vadd.f32 %v143_v27, %v89_v35 }
 0x193   :  { %v94_v39 = vsel %vm93_vm7, %v143_v27, %v90_v37 }
 0x194   :  { %v99_v40 = vsel %vm96_vm8, %v98_v38, %v94_v39 }
 0x195   :  { %v100_v41 = vmul.f32 %v139_v17, %v99_v40 }
 0x197   :  { %102 = vst [vmem:[#allocation2 + $0x8] sm:$0xff] %v100_v41 }
 0x198   :  { %115 = dma.vmem_to_hbm [thread:$0]  %s108_s1, 256, %s110_s23, [#allocation3], %s171_s24, %s171_s24, %s172_s25  }
 0x199   :  { %168 = dma.done.wait [#allocation3], 256  }
 0x19a   :  { %169 = vsyncadd [#allocation3], 4294967040 }
 0x19b   :  { %120 = vsyncpa [#allocation3], 1 }

</bundles_post_ra>
